<compile_context>
chip_gen: v6e
topology: v6e:2x2x1
jax: 0.10.0
libtpu: 0.0.40
codegen_flags: <defaults>
</compile_context>

<pallas_src>
import jax
import jax.numpy as jnp
from jax.experimental import pallas as pl
from jax.experimental.pallas import tpu as pltpu

O_DIM = 64
Z_DIM = 20
H_DIM = 256
A_DIM = 1
BATCH = 8
Z_PAD = 128  # lane-dense padded width for all Z-sized tensors

# row offsets inside the packed (704, 256) bf16 weight slab (all multiples of 16)
ROW_EW1 = 0      # (64, 256)
ROW_EW2 = 64     # (256, 256)
ROW_FW1Z = 320   # (128, 256)  fw1 z-part zero-padded from 20 to 128 rows
ROW_FW2 = 448    # (256, 256)
W256_ROWS = 704

# row offsets inside the packed (512, 128) bf16 slab
ROW_EW3 = 0      # (256, 128)  ew3 zero-padded from 20 to 128 output lanes
ROW_FW3 = 256    # (256, 128)  fw3 zero-padded likewise
W128_ROWS = 512

# rows inside the (8, 256) f32 bias / a-row slab
B_EB1, B_EB2, B_EB3, B_FB1, B_FB2, B_FB3, B_FW1A = 0, 1, 2, 3, 4, 5, 6


def fused_kernel(oo_ref, a_ref, w256_ref, w128_ref, bias_ref, out_ref):
    """zz = Encoder([o;o_next]); z_next = FwModel(z, a); out = rows [z|z_next|z_target]."""
    B = a_ref.shape[0]

    # ---- shared encoder over the stacked [o ; o_next] batch (2B rows) ----
    oo = oo_ref[...].astype(jnp.bfloat16)
    h = jnp.dot(oo, w256_ref[ROW_EW1:ROW_EW1 + O_DIM, :],
                preferred_element_type=jnp.float32)
    h = jnp.maximum(h + bias_ref[B_EB1:B_EB1 + 1, :], 0.0)
    h = jnp.dot(h.astype(jnp.bfloat16), w256_ref[ROW_EW2:ROW_EW2 + H_DIM, :],
                preferred_element_type=jnp.float32)
    h = jnp.maximum(h + bias_ref[B_EB2:B_EB2 + 1, :], 0.0)
    zz = jnp.dot(h.astype(jnp.bfloat16), w128_ref[ROW_EW3:ROW_EW3 + H_DIM, :],
                 preferred_element_type=jnp.float32)
    zz = zz + bias_ref[B_EB3:B_EB3 + 1, 0:Z_PAD]        # (2B, 128); lanes 20: are 0

    z = zz[:B]          # rows 0:B   (sublane-aligned split, B == 8)
    z_target = zz[B:]   # rows B:2B

    # ---- deterministic forward model on (z, a) ----
    # first Linear over concat([z, a]) computed as z_pad @ W1z_pad + a * w1a + b1
    g = jnp.dot(z.astype(jnp.bfloat16), w256_ref[ROW_FW1Z:ROW_FW1Z + Z_PAD, :],
                preferred_element_type=jnp.float32)
    g = g + a_ref[...] * bias_ref[B_FW1A:B_FW1A + 1, :]  # (B,1) * (1,H) f32 broadcast
    g = jnp.maximum(g + bias_ref[B_FB1:B_FB1 + 1, :], 0.0)
    g = jnp.dot(g.astype(jnp.bfloat16), w256_ref[ROW_FW2:ROW_FW2 + H_DIM, :],
                preferred_element_type=jnp.float32)
    g = jnp.maximum(g + bias_ref[B_FB2:B_FB2 + 1, :], 0.0)
    z_next = jnp.dot(g.astype(jnp.bfloat16), w128_ref[ROW_FW3:ROW_FW3 + H_DIM, :],
                     preferred_element_type=jnp.float32)
    z_next = z_next + bias_ref[B_FB3:B_FB3 + 1, 0:Z_PAD]

    # ---- sublane-stacked lane-dense output: three unmasked (8,128) stores ----
    out_ref[0:B, :] = z
    out_ref[B:2 * B, :] = z_next
    out_ref[2 * B:3 * B, :] = z_target


@jax.jit
def deterministic_fw_forward(o, a, o_next, w256, w128, bias):
    """Matches DeterministicFW.forward: returns (z, z_next, z_target)."""
    B = o.shape[0]
    oo = jnp.concatenate([o, o_next], axis=0)            # (2B, O_DIM)
    vmem = pl.BlockSpec(memory_space=pltpu.MemorySpace.VMEM)
    packed = pl.pallas_call(
        fused_kernel,
        in_specs=[vmem] * 5,
        out_specs=vmem,
        out_shape=jax.ShapeDtypeStruct((3 * B, Z_PAD), jnp.float32),
    )(oo, a, w256, w128, bias)
    z = packed[0:B, :Z_DIM]
    z_next = packed[B:2 * B, :Z_DIM]
    z_target = packed[2 * B:3 * B, :Z_DIM]
    return z, z_next, z_target


# --------------------------------------------------------------------------
# Parameter init (PyTorch-Linear-style uniform(+-1/sqrt(fan_in))) + packing
# --------------------------------------------------------------------------
def _linear_init(key, fan_in, fan_out):
    kw, kb = jax.random.split(key)
    bound = 1.0 / jnp.sqrt(jnp.float32(fan_in))
    w = jax.random.uniform(kw, (fan_in, fan_out), jnp.float32, -bound, bound)
    b = jax.random.uniform(kb, (fan_out,), jnp.float32, -bound, bound)
    return w, b


def init_params(key):
    keys = jax.random.split(key, 6)
    # encoder
    ew1, eb1 = _linear_init(keys[0], O_DIM, H_DIM)
    ew2, eb2 = _linear_init(keys[1], H_DIM, H_DIM)
    ew3, eb3 = _linear_init(keys[2], H_DIM, Z_DIM)
    # forward model (first layer over concat([z, a]) split into z-part / a-part)
    fw1, fb1 = _linear_init(keys[3], Z_DIM + A_DIM, H_DIM)
    fw2, fb2 = _linear_init(keys[4], H_DIM, H_DIM)
    fw3, fb3 = _linear_init(keys[5], H_DIM, Z_DIM)
    fw1z, fw1a = fw1[:Z_DIM, :], fw1[Z_DIM:, :]           # (20,H), (1,H)

    # slab 1: all 256-output-column weights, bf16, row offsets multiples of 16
    fw1z_pad = jnp.zeros((Z_PAD, H_DIM), jnp.float32).at[:Z_DIM, :].set(fw1z)
    w256 = jnp.concatenate([ew1, ew2, fw1z_pad, fw2], axis=0).astype(jnp.bfloat16)
    assert w256.shape == (W256_ROWS, H_DIM)

    # slab 2: z-producing weights zero-padded to 128 output lanes, bf16
    ew3_pad = jnp.zeros((H_DIM, Z_PAD), jnp.float32).at[:, :Z_DIM].set(ew3)
    fw3_pad = jnp.zeros((H_DIM, Z_PAD), jnp.float32).at[:, :Z_DIM].set(fw3)
    w128 = jnp.concatenate([ew3_pad, fw3_pad], axis=0).astype(jnp.bfloat16)
    assert w128.shape == (W128_ROWS, Z_PAD)

    # slab 3: biases + fw1 a-row, kept in f32 (elementwise path)
    bias = jnp.zeros((8, H_DIM), jnp.float32)
    bias = bias.at[B_EB1, :].set(eb1)
    bias = bias.at[B_EB2, :].set(eb2)
    bias = bias.at[B_EB3, :Z_DIM].set(eb3)
    bias = bias.at[B_FB1, :].set(fb1)
    bias = bias.at[B_FB2, :].set(fb2)
    bias = bias.at[B_FB3, :Z_DIM].set(fb3)
    bias = bias.at[B_FW1A, :].set(fw1a[0])
    return w256, w128, bias


# --------------------------------------------------------------------------
# Pure-JAX reference using the same packed (bf16-cast) params, for validation
# --------------------------------------------------------------------------
def reference_forward(o, a, o_next, w256, w128, bias):
    def enc(x):
        h = jnp.dot(x.astype(jnp.bfloat16),
                    w256[ROW_EW1:ROW_EW1 + O_DIM, :],
                    preferred_element_type=jnp.float32)
        h = jnp.maximum(h + bias[B_EB1], 0.0)
        h = jnp.dot(h.astype(jnp.bfloat16),
                    w256[ROW_EW2:ROW_EW2 + H_DIM, :],
                    preferred_element_type=jnp.float32)
        h = jnp.maximum(h + bias[B_EB2], 0.0)
        zp = jnp.dot(h.astype(jnp.bfloat16),
                     w128[ROW_EW3:ROW_EW3 + H_DIM, :],
                     preferred_element_type=jnp.float32) + bias[B_EB3, :Z_PAD]
        return zp

    z_pad = enc(o)
    z_target_pad = enc(o_next)
    g = jnp.dot(z_pad.astype(jnp.bfloat16),
                w256[ROW_FW1Z:ROW_FW1Z + Z_PAD, :],
                preferred_element_type=jnp.float32)
    g = g + a * bias[B_FW1A]
    g = jnp.maximum(g + bias[B_FB1], 0.0)
    g = jnp.dot(g.astype(jnp.bfloat16),
                w256[ROW_FW2:ROW_FW2 + H_DIM, :],
                preferred_element_type=jnp.float32)
    g = jnp.maximum(g + bias[B_FB2], 0.0)
    z_next_pad = jnp.dot(g.astype(jnp.bfloat16),
                         w128[ROW_FW3:ROW_FW3 + H_DIM, :],
                         preferred_element_type=jnp.float32) + bias[B_FB3, :Z_PAD]
    return z_pad[:, :Z_DIM], z_next_pad[:, :Z_DIM], z_target_pad[:, :Z_DIM]


if __name__ == "__main__":
    key = jax.random.PRNGKey(0)
    k_params, k_o, k_a, k_on = jax.random.split(key, 4)

    w256, w128, bias = init_params(k_params)

    o = jax.random.normal(k_o, (BATCH, O_DIM), jnp.float32)
    a = jax.random.normal(k_a, (BATCH, A_DIM), jnp.float32)
    o_next = jax.random.normal(k_on, (BATCH, O_DIM), jnp.float32)

    z, z_next, z_target = deterministic_fw_forward(o, a, o_next, w256, w128, bias)
    jax.block_until_ready((z, z_next, z_target))

    assert z.shape == (BATCH, Z_DIM)
    assert z_next.shape == (BATCH, Z_DIM)
    assert z_target.shape == (BATCH, Z_DIM)
    assert bool(jnp.all(jnp.isfinite(z)))
    assert bool(jnp.all(jnp.isfinite(z_next)))
    assert bool(jnp.all(jnp.isfinite(z_target)))

    # numerical check against a pure-JAX reference using the same bf16 weights
    zr, znr, ztr = reference_forward(o, a, o_next, w256, w128, bias)
    assert bool(jnp.allclose(z, zr, rtol=1e-2, atol=1e-2))
    assert bool(jnp.allclose(z_next, znr, rtol=1e-2, atol=1e-2))
    assert bool(jnp.allclose(z_target, ztr, rtol=1e-2, atol=1e-2))

    print("KERNEL_OK")
</pallas_src>

<mosaic_0001>
module attributes {stable_mosaic.version = 11 : i64} {
  func.func @fused_kernel(%arg0: memref<16x64xf32, #tpu.memory_space<vmem>>, %arg1: memref<8x1xf32, #tpu.memory_space<vmem>>, %arg2: memref<704x256xbf16, #tpu.memory_space<vmem>>, %arg3: memref<512x128xbf16, #tpu.memory_space<vmem>>, %arg4: memref<8x256xf32, #tpu.memory_space<vmem>>, %arg5: memref<24x128xf32, #tpu.memory_space<vmem>>) attributes {dimension_semantics = [], scalar_prefetch = 0 : i64, scratch_operands = 0 : i64, tpu.core_type = #tpu.core_type<tc>} {
    %c0 = arith.constant 0 : index
    %c0_0 = arith.constant 0 : index
    %0 = vector.load %arg0[%c0, %c0_0] : memref<16x64xf32, #tpu.memory_space<vmem>>, vector<16x64xf32>
    %1 = arith.truncf %0 : vector<16x64xf32> to vector<16x64xbf16>
    %c0_1 = arith.constant 0 : index
    %c0_2 = arith.constant 0 : index
    %2 = vector.load %arg2[%c0_1, %c0_2] : memref<704x256xbf16, #tpu.memory_space<vmem>>, vector<64x256xbf16>
    %cst = arith.constant dense<0.000000e+00> : vector<16x256xf32>
    %3 = tpu.matmul %1, %2, %cst {dimension_numbers = #tpu.dot_dimension_numbers<[1], [0], [0], [1], [0, 0, 1, 1], [], []>} : vector<16x64xbf16>, vector<64x256xbf16>, vector<16x256xf32> -> vector<16x256xf32>
    %c0_3 = arith.constant 0 : index
    %c0_4 = arith.constant 0 : index
    %4 = vector.load %arg4[%c0_3, %c0_4] : memref<8x256xf32, #tpu.memory_space<vmem>>, vector<1x256xf32>
    %5 = vector.broadcast %4 : vector<1x256xf32> to vector<16x256xf32>
    %6 = arith.addf %3, %5 : vector<16x256xf32>
    %cst_5 = arith.constant 0.000000e+00 : f32
    %7 = vector.broadcast %cst_5 : f32 to vector<16x256xf32>
    %8 = arith.maximumf %6, %7 : vector<16x256xf32>
    %9 = arith.truncf %8 : vector<16x256xf32> to vector<16x256xbf16>
    %c64 = arith.constant 64 : index
    %c0_6 = arith.constant 0 : index
    %10 = vector.load %arg2[%c64, %c0_6] : memref<704x256xbf16, #tpu.memory_space<vmem>>, vector<256x256xbf16>
    %cst_7 = arith.constant dense<0.000000e+00> : vector<16x256xf32>
    %11 = tpu.matmul %9, %10, %cst_7 {dimension_numbers = #tpu.dot_dimension_numbers<[1], [0], [0], [1], [0, 0, 1, 1], [], []>} : vector<16x256xbf16>, vector<256x256xbf16>, vector<16x256xf32> -> vector<16x256xf32>
    %c1 = arith.constant 1 : index
    %c0_8 = arith.constant 0 : index
    %12 = vector.load %arg4[%c1, %c0_8] : memref<8x256xf32, #tpu.memory_space<vmem>>, vector<1x256xf32>
    %13 = vector.broadcast %12 : vector<1x256xf32> to vector<16x256xf32>
    %14 = arith.addf %11, %13 : vector<16x256xf32>
    %cst_9 = arith.constant 0.000000e+00 : f32
    %15 = vector.broadcast %cst_9 : f32 to vector<16x256xf32>
    %16 = arith.maximumf %14, %15 : vector<16x256xf32>
    %17 = arith.truncf %16 : vector<16x256xf32> to vector<16x256xbf16>
    %c0_10 = arith.constant 0 : index
    %c0_11 = arith.constant 0 : index
    %18 = vector.load %arg3[%c0_10, %c0_11] : memref<512x128xbf16, #tpu.memory_space<vmem>>, vector<256x128xbf16>
    %cst_12 = arith.constant dense<0.000000e+00> : vector<16x128xf32>
    %19 = tpu.matmul %17, %18, %cst_12 {dimension_numbers = #tpu.dot_dimension_numbers<[1], [0], [0], [1], [0, 0, 1, 1], [], []>} : vector<16x256xbf16>, vector<256x128xbf16>, vector<16x128xf32> -> vector<16x128xf32>
    %c2 = arith.constant 2 : index
    %c0_13 = arith.constant 0 : index
    %20 = vector.load %arg4[%c2, %c0_13] : memref<8x256xf32, #tpu.memory_space<vmem>>, vector<1x128xf32>
    %21 = vector.broadcast %20 : vector<1x128xf32> to vector<16x128xf32>
    %22 = arith.addf %19, %21 : vector<16x128xf32>
    %23 = vector.extract_strided_slice %22 {offsets = [0, 0], sizes = [8, 128], strides = [1, 1]} : vector<16x128xf32> to vector<8x128xf32>
    %24 = vector.extract_strided_slice %22 {offsets = [8, 0], sizes = [8, 128], strides = [1, 1]} : vector<16x128xf32> to vector<8x128xf32>
    %25 = arith.truncf %23 : vector<8x128xf32> to vector<8x128xbf16>
    %c320 = arith.constant 320 : index
    %c0_14 = arith.constant 0 : index
    %26 = vector.load %arg2[%c320, %c0_14] : memref<704x256xbf16, #tpu.memory_space<vmem>>, vector<128x256xbf16>
    %cst_15 = arith.constant dense<0.000000e+00> : vector<8x256xf32>
    %27 = tpu.matmul %25, %26, %cst_15 {dimension_numbers = #tpu.dot_dimension_numbers<[1], [0], [0], [1], [0, 0, 1, 1], [], []>} : vector<8x128xbf16>, vector<128x256xbf16>, vector<8x256xf32> -> vector<8x256xf32>
    %c0_16 = arith.constant 0 : index
    %c0_17 = arith.constant 0 : index
    %28 = vector.load %arg1[%c0_16, %c0_17] : memref<8x1xf32, #tpu.memory_space<vmem>>, vector<8x1xf32>
    %c6 = arith.constant 6 : index
    %c0_18 = arith.constant 0 : index
    %29 = vector.load %arg4[%c6, %c0_18] : memref<8x256xf32, #tpu.memory_space<vmem>>, vector<1x256xf32>
    %30 = vector.broadcast %28 : vector<8x1xf32> to vector<8x256xf32>
    %31 = vector.broadcast %29 : vector<1x256xf32> to vector<8x256xf32>
    %32 = arith.mulf %30, %31 : vector<8x256xf32>
    %33 = arith.addf %27, %32 : vector<8x256xf32>
    %c3 = arith.constant 3 : index
    %c0_19 = arith.constant 0 : index
    %34 = vector.load %arg4[%c3, %c0_19] : memref<8x256xf32, #tpu.memory_space<vmem>>, vector<1x256xf32>
    %35 = vector.broadcast %34 : vector<1x256xf32> to vector<8x256xf32>
    %36 = arith.addf %33, %35 : vector<8x256xf32>
    %cst_20 = arith.constant 0.000000e+00 : f32
    %37 = vector.broadcast %cst_20 : f32 to vector<8x256xf32>
    %38 = arith.maximumf %36, %37 : vector<8x256xf32>
    %39 = arith.truncf %38 : vector<8x256xf32> to vector<8x256xbf16>
    %c448 = arith.constant 448 : index
    %c0_21 = arith.constant 0 : index
    %40 = vector.load %arg2[%c448, %c0_21] : memref<704x256xbf16, #tpu.memory_space<vmem>>, vector<256x256xbf16>
    %cst_22 = arith.constant dense<0.000000e+00> : vector<8x256xf32>
    %41 = tpu.matmul %39, %40, %cst_22 {dimension_numbers = #tpu.dot_dimension_numbers<[1], [0], [0], [1], [0, 0, 1, 1], [], []>} : vector<8x256xbf16>, vector<256x256xbf16>, vector<8x256xf32> -> vector<8x256xf32>
    %c4 = arith.constant 4 : index
    %c0_23 = arith.constant 0 : index
    %42 = vector.load %arg4[%c4, %c0_23] : memref<8x256xf32, #tpu.memory_space<vmem>>, vector<1x256xf32>
    %43 = vector.broadcast %42 : vector<1x256xf32> to vector<8x256xf32>
    %44 = arith.addf %41, %43 : vector<8x256xf32>
    %cst_24 = arith.constant 0.000000e+00 : f32
    %45 = vector.broadcast %cst_24 : f32 to vector<8x256xf32>
    %46 = arith.maximumf %44, %45 : vector<8x256xf32>
    %47 = arith.truncf %46 : vector<8x256xf32> to vector<8x256xbf16>
    %c256 = arith.constant 256 : index
    %c0_25 = arith.constant 0 : index
    %48 = vector.load %arg3[%c256, %c0_25] : memref<512x128xbf16, #tpu.memory_space<vmem>>, vector<256x128xbf16>
    %cst_26 = arith.constant dense<0.000000e+00> : vector<8x128xf32>
    %49 = tpu.matmul %47, %48, %cst_26 {dimension_numbers = #tpu.dot_dimension_numbers<[1], [0], [0], [1], [0, 0, 1, 1], [], []>} : vector<8x256xbf16>, vector<256x128xbf16>, vector<8x128xf32> -> vector<8x128xf32>
    %c5 = arith.constant 5 : index
    %c0_27 = arith.constant 0 : index
    %50 = vector.load %arg4[%c5, %c0_27] : memref<8x256xf32, #tpu.memory_space<vmem>>, vector<1x128xf32>
    %51 = vector.broadcast %50 : vector<1x128xf32> to vector<8x128xf32>
    %52 = arith.addf %49, %51 : vector<8x128xf32>
    %c0_28 = arith.constant 0 : index
    %c0_29 = arith.constant 0 : index
    %53 = vector.load %arg5[%c0_28, %c0_29] : memref<24x128xf32, #tpu.memory_space<vmem>>, vector<8x128xf32>
    tpu.vector_store %arg5[%c0_28, %c0_29], %23 {strides = array<i32>} : memref<24x128xf32, #tpu.memory_space<vmem>>, vector<8x128xf32>,
    %c8 = arith.constant 8 : index
    %c0_30 = arith.constant 0 : index
    %54 = vector.load %arg5[%c8, %c0_30] : memref<24x128xf32, #tpu.memory_space<vmem>>, vector<8x128xf32>
    tpu.vector_store %arg5[%c8, %c0_30], %52 {strides = array<i32>} : memref<24x128xf32, #tpu.memory_space<vmem>>, vector<8x128xf32>,
    %c16 = arith.constant 16 : index
    %c0_31 = arith.constant 0 : index
    %55 = vector.load %arg5[%c16, %c0_31] : memref<24x128xf32, #tpu.memory_space<vmem>>, vector<8x128xf32>
    tpu.vector_store %arg5[%c16, %c0_31], %24 {strides = array<i32>} : memref<24x128xf32, #tpu.memory_space<vmem>>, vector<8x128xf32>,
    return
  }
}

</mosaic_0001>

<bundles_post_ra>
// kernel: deterministic_fw_forward.1
= control target key start
LH: loop header
LB: loop body
LE: loop exit
PB: predicated region body
PF: predicated region fallthrough
CT: control target
= control target key end

     0   :  { %10 = vsyncpa [#allocation3], 0  ;;  %s1679_s0 = inlined_call_operand.vmem [shape: f32[16,64], index: 0, kind: input, shape index: {}]   ;;  %s1680_s1 = inlined_call_operand.vmem [shape: f32[8,1], index: 1, kind: input, shape index: {}]   ;;  %s1681_s2 = inlined_call_operand.hbm [shape: bf16[704,256], index: 2, kind: input, shape index: {}]   ;;  %s1682_s3 = inlined_call_operand.hbm [shape: bf16[512,128], index: 3, kind: input, shape index: {}]   ;;  %s1683_s4 = inlined_call_operand.vmem [shape: f32[8,256], index: 4, kind: input, shape index: {}]   ;;  %s1684_s5 = inlined_call_operand.vmem [shape: f32[24,128], index: 5, kind: output, shape index: {}]  }
   0x1   :  { %11 = vsyncpa [#allocation5], 0  ;;  %s1580_s18 = smov [#allocation2]  }
   0x2   :  { %s21_s19 = sshll.u32 %s1580_s18, 4  ;;  %s22_s19 = int_to_ptr.vmem [resolvable:$true] %s21_s19 }
   0x3   :  { %s1544_s20 = scalar_lea.vmem %s22_s19, 11264  ;;  %p1549_p1 = scmp.lt.s32.totalorder %s22_s19, %s22_s19 }
   0x4   :  { %p1545_p0 = scmp.ne.s32.totalorder %s22_s19, %s1544_s20  ;;  %p1550_p2 = scmp.lt.s32.totalorder %s1544_s20, %s1544_s20 }
   0x6   :  { %p1551_p3 = por %p1550_p2, %p1549_p1 }
   0x8   :  { %p1552_p4 = pnand %p1551_p3, %p1545_p0 }
   0xa   :  { %1555 = shalt.err (!%p1552_p4)
}
   0xb   :  { %s1581_s21 = smov 128   ;;  %s1582_s22 = smov 8  }
   0xc   :  { %27 = dma.hbm_to_vmem [thread:$0]  %s1681_s2, 11264, %s22_s19, [#allocation3], %s1581_s21, %s1581_s21, %s1582_s22  }
   0xd   :  { %s1583_s25 = smov [#allocation4]  }
   0xe   :  { %s33_s26 = sshll.u32 %s1583_s25, 4  ;;  %s34_s26 = int_to_ptr.vmem [resolvable:$true] %s33_s26 }
   0xf   :  { %s1564_s27 = scalar_lea.vmem %s34_s26, 4096  ;;  %p1569_p6 = scmp.lt.s32.totalorder %s34_s26, %s34_s26 }
  0x10   :  { %p1565_p5 = scmp.ne.s32.totalorder %s34_s26, %s1564_s27  ;;  %p1570_p7 = scmp.lt.s32.totalorder %s1564_s27, %s1564_s27 }
  0x12   :  { %p1571_p8 = por %p1570_p7, %p1569_p6 }
  0x14   :  { %p1572_p9 = pnand %p1571_p8, %p1565_p5 }
  0x16   :  { %1575 = shalt.err (!%p1572_p9)
}
  0x17   :  { %s1584_s28 = smov 64   ;;  %s1585_s29 = smov 4  }
  0x18   :  { %39 = dma.hbm_to_vmem [thread:$0]  %s1682_s3, 4096, %s34_s26, [#allocation5], %s1584_s28, %s1584_s28, %s1585_s29  }
  0x19   :  { %1576 = dma.done.wait [#allocation3], 11264  }
  0x1a   :  { %1577 = vsyncadd [#allocation3], 4294956032 }
  0x1b   :  { %1578 = dma.done.wait [#allocation5], 4096  }
  0x1c   :  { %1579 = vsyncadd [#allocation5], 4294963200  ;;  %v1586_v0 = vmov 0   ;;  %v1372_v1 = vld [vmem:[#allocation2 + $0x34] ss:$8 sps:$4 sm:$0xff]   ;;  %v49_v12 = vld [vmem:[%s1679_s0] sm:$0xff]  ;;  %v62_v54 = vlaneseq }
  0x1d   :  { %148 = vmatprep.mubr.bf16.mxu0 %v1586_v0  ;;  %1371 = vset.pattern.permute.xlu0 %v1586_v0  ;;  %v1374_v2 = vld [vmem:[#allocation2 + $0x30] ss:$8 sps:$4 sm:$0xff]   ;;  %v1375_v3 = vld [vmem:[#allocation2 + $0x24] ss:$8 sps:$4 sm:$0xff]   ;;  %v1377_v4 = vld [vmem:[#allocation2 + $0x20] ss:$8 sps:$4 sm:$0xff]  }
  0x1e   :  { %124 = vmatprep.subr.bf16.mxu0 %v1372_v1  ;;  %v1378_v5 = vld [vmem:[#allocation2 + $0x14] ss:$8 sps:$4 sm:$0xff]   ;;  %v1380_v6 = vld [vmem:[#allocation2 + $0x10] ss:$8 sps:$4 sm:$0xff]   ;;  %v1381_v9 = vld [vmem:[#allocation2 + $0x4] ss:$8 sps:$4 sm:$0xff]  }
  0x1f   :  { %125 = vmatpush1.bf16.msra.mxu0 %v1374_v2  ;;  %v1384_v7 = vld [vmem:[#allocation2 + $0xb4] ss:$8 sps:$4 sm:$0xff]   ;;  %v1386_v8 = vld [vmem:[#allocation2 + $0xb0] ss:$8 sps:$4 sm:$0xff]   ;;  %v1387_v10 = vld [vmem:[#allocation2 + $0xa4] ss:$8 sps:$4 sm:$0xff]  }
  0x20   :  { %126 = vmatprep.subr.bf16.mxu0 %v1375_v3  ;;  %370 = vmatprep.subr.bf16.mxu1 %v1384_v7  ;;  %v1383_v11 = vld [vmem:[#allocation2] ss:$8 sps:$4 sm:$0xff]   ;;  %v1390_v14 = vld [vmem:[#allocation2 + $0x94] ss:$8 sps:$4 sm:$0xff]   ;;  %v1392_v16 = vld [vmem:[#allocation2 + $0x90] ss:$8 sps:$4 sm:$0xff]  }
  0x21   :  { %371 = vmatpush1.bf16.msra.mxu1 %v1386_v8  ;;  %v1389_v13 = vld [vmem:[#allocation2 + $0xa0] ss:$8 sps:$4 sm:$0xff]   ;;  %v1393_v18 = vld [vmem:[#allocation2 + $0x84] ss:$8 sps:$4 sm:$0xff]   ;;  %vm112_vm0 = vcmask 523264   ;;  %v1432_v44 = vld [vmem:[#allocation4 + $0x78] sm:$0xff]  }
  0x22   :  { %372 = vmatprep.subr.bf16.mxu1 %v1387_v10  ;;  %v50_v15 = vld [vmem:[%s1679_s0 + $0x8] sm:$0xff]  ;;  %v1396_v20 = vld [vmem:[#allocation2 + $0x74] ss:$8 sps:$4 sm:$0xff]   ;;  %v1398_v21 = vld [vmem:[#allocation2 + $0x70] ss:$8 sps:$4 sm:$0xff]   ;;  %v63_v55 = vshrl.u32 %v62_v54, 7 }
  0x23   :  { %127 = vmatpush1.bf16.msra.mxu0 %v1377_v4  ;;  %v51_v17 = vpack.c.bf16 %v50_v15, %v49_v12  ;;  %v1395_v19 = vld [vmem:[#allocation2 + $0x80] ss:$8 sps:$4 sm:$0xff]   ;;  %v1399_v22 = vld [vmem:[#allocation2 + $0x64] ss:$8 sps:$4 sm:$0xff]   ;;  %v1402_v24 = vld [vmem:[#allocation2 + $0x54] ss:$8 sps:$4 sm:$0xff]  }
  0x24   :  { %128 = vmatprep.subr.bf16.mxu0 %v1378_v5  ;;  %v1401_v23 = vld [vmem:[#allocation2 + $0x60] ss:$8 sps:$4 sm:$0xff]   ;;  %v1404_v25 = vld [vmem:[#allocation2 + $0x50] ss:$8 sps:$4 sm:$0xff]   ;;  %v1405_v26 = vld [vmem:[#allocation2 + $0x44] ss:$8 sps:$4 sm:$0xff]  }
  0x25   :  { %373 = vmatpush1.bf16.msra.mxu1 %v1389_v13  ;;  %v1407_v27 = vld [vmem:[#allocation2 + $0x40] ss:$8 sps:$4 sm:$0xff]   ;;  %v1408_v28 = vld [vmem:[#allocation2 + $0x134] ss:$8 sps:$4 sm:$0xff]   ;;  %v1410_v29 = vld [vmem:[#allocation2 + $0x130] ss:$8 sps:$4 sm:$0xff]  }
  0x26   :  { %374 = vmatprep.subr.bf16.mxu1 %v1390_v14  ;;  %v1411_v30 = vld [vmem:[#allocation2 + $0x124] ss:$8 sps:$4 sm:$0xff]   ;;  %v1413_v31 = vld [vmem:[#allocation2 + $0x120] ss:$8 sps:$4 sm:$0xff]   ;;  %v1414_v32 = vld [vmem:[#allocation2 + $0x114] ss:$8 sps:$4 sm:$0xff]  }
  0x27   :  { %129 = vmatpush1.bf16.msra.mxu0 %v1380_v6  ;;  %v1416_v33 = vld [vmem:[#allocation2 + $0x110] ss:$8 sps:$4 sm:$0xff]   ;;  %v1417_v34 = vld [vmem:[#allocation2 + $0x104] ss:$8 sps:$4 sm:$0xff]   ;;  %v1419_v35 = vld [vmem:[#allocation2 + $0x100] ss:$8 sps:$4 sm:$0xff]  }
  0x28   :  { %130 = vmatprep.subr.bf16.mxu0 %v1381_v9  ;;  %v1420_v36 = vld [vmem:[#allocation2 + $0xf4] ss:$8 sps:$4 sm:$0xff]   ;;  %v1422_v37 = vld [vmem:[#allocation2 + $0xf0] ss:$8 sps:$4 sm:$0xff]   ;;  %v1423_v38 = vld [vmem:[#allocation2 + $0xe4] ss:$8 sps:$4 sm:$0xff]  }
  0x29   :  { %375 = vmatpush1.bf16.msra.mxu1 %v1392_v16  ;;  %v1425_v39 = vld [vmem:[#allocation2 + $0xe0] ss:$8 sps:$4 sm:$0xff]   ;;  %v1426_v40 = vld [vmem:[#allocation2 + $0xd4] ss:$8 sps:$4 sm:$0xff]   ;;  %v1428_v41 = vld [vmem:[#allocation2 + $0xd0] ss:$8 sps:$4 sm:$0xff]  }
  0x2a   :  { %376 = vmatprep.subr.bf16.mxu1 %v1393_v18  ;;  %v1429_v42 = vld [vmem:[#allocation2 + $0xc4] ss:$8 sps:$4 sm:$0xff]   ;;  %v1431_v43 = vld [vmem:[#allocation2 + $0xc0] ss:$8 sps:$4 sm:$0xff]   ;;  %v1433_v45 = vld [vmem:[#allocation4 + $0x38] sm:$0xff]   ;;  %v1631_v56 = vsub.s32 1, %v63_v55 }
  0x2b   :  { %131 = vmatpush1.bf16.msra.mxu0 %v1383_v11  ;;  %v1434_v46 = vld [vmem:[#allocation4 + $0x70] sm:$0xff]   ;;  %v1436_v48 = vld [vmem:[#allocation4 + $0x68] sm:$0xff]   ;;  %v1438_v50 = vld [vmem:[#allocation4 + $0x60] sm:$0xff]   ;;  %v1633_v57 = vsub.s32 0, %v63_v55 }
  0x2c   :  { %1320 = vmatprep.subr.bf16.mxu0 %v1432_v44  ;;  %v1435_v47 = vld [vmem:[#allocation4 + $0x30] sm:$0xff]   ;;  %v1437_v49 = vld [vmem:[#allocation4 + $0x28] sm:$0xff]   ;;  %v1439_v51 = vld [vmem:[#allocation4 + $0x20] sm:$0xff]  }
  0x2d   :  { %377 = vmatpush1.bf16.msra.mxu1 %v1395_v19  ;;  %v1440_v52 = vld [vmem:[#allocation4 + $0x58] sm:$0xff]   ;;  %v60_v58 = vld [vmem:[%s1683_s4] ss:$8 sm:$0x3]  ;;  %v1442_v12 = vld [vmem:[#allocation4 + $0x50] sm:$0xff]  }
  0x2e   :  { %1203 = vmatmul.mubr.msk.bf16.vlgmr.msra.gmra.mxu0 %vm112_vm0, %v51_v17  ;;  %378 = vmatprep.subr.bf16.mxu1 %v1396_v20  ;;  %v1441_v53 = vld [vmem:[#allocation4 + $0x18] sm:$0xff]   ;;  %v69_v60 = vrot.slane %v60_v58, %v1631_v56  ;;  %v65_v61 = vrot.slane %v60_v58, %v1633_v57  ;;  %v1443_v13 = vld [vmem:[#allocation4 + $0x10] sm:$0xff]   ;;  %v1444_v14 = vld [vmem:[#allocation4 + $0x48] sm:$0xff]  }
  0x2f   :  { %1321 = vmatpush3.bf16.msra.mxu0 %v1433_v45  ;;  %v1445_v15 = vld [vmem:[#allocation4 + $0x8] sm:$0xff]   ;;  %v1446_v16 = vld [vmem:[#allocation4 + $0x40] sm:$0xff]   ;;  %v1450_v18 = vld [vmem:[#allocation2 + $0x1b4] ss:$8 sps:$4 sm:$0xff]  }
  0x30   :  { %1322 = vmatprep.subr.bf16.mxu0 %v1434_v46  ;;  %v1447_v17 = vld [vmem:[#allocation4] sm:$0xff]   ;;  %v1460_v44 = vld [vmem:[#allocation2 + $0x170] ss:$8 sps:$4 sm:$0xff]   ;;  %v1480_v55 = vld [vmem:[#allocation2 + $0x214] ss:$8 sps:$4 sm:$0xff]  }
  0x31   :  { %379 = vmatpush1.bf16.msra.mxu1 %v1398_v21  ;;  %v1204_v19 = vld [vmem:[%s1683_s4 + $0x1] ss:$8 sm:$0x3]  ;;  %v1465_v45 = vld [vmem:[#allocation2 + $0x164] ss:$8 sps:$4 sm:$0xff]  }
  0x32   :  { %380 = vmatprep.subr.bf16.mxu1 %v1399_v22  ;;  %v207_v21 = vrot.slane %v1204_v19, %v1631_v56  ;;  %v203_v22 = vrot.slane %v1204_v19, %v1633_v57  ;;  %v1463_v46 = vld [vmem:[#allocation2 + $0x160] ss:$8 sps:$4 sm:$0xff]   ;;  %v1478_v58 = vld [vmem:[#allocation2 + $0x210] ss:$8 sps:$4 sm:$0xff]  }
  0x33   :  { %1323 = vmatpush3.bf16.msra.mxu0 %v1435_v47  ;;  %v1468_v47 = vld [vmem:[#allocation2 + $0x154] ss:$8 sps:$4 sm:$0xff]   ;;  %v1475_v54 = vld [vmem:[#allocation2 + $0x220] ss:$8 sps:$4 sm:$0xff]  }
  0x34   :  { %1324 = vmatprep.subr.bf16.mxu0 %v1436_v48  ;;  %v1471_v48 = vld [vmem:[#allocation2 + $0x144] ss:$8 sps:$4 sm:$0xff]  }
  0x35   :  { %381 = vmatpush1.bf16.msra.mxu1 %v1401_v23 }
  0x36   :  { %382 = vmatprep.subr.bf16.mxu1 %v1402_v24 }
  0x37   :  { %1325 = vmatpush3.bf16.msra.mxu0 %v1437_v49  ;;  %v1469_v49 = vld [vmem:[#allocation2 + $0x140] ss:$8 sps:$4 sm:$0xff]  }
  0x38   :  { %1326 = vmatprep.subr.bf16.mxu0 %v1438_v50  ;;  %v606_v50 = vld [vmem:[%s1680_s1] sm:$0xff] }
  0x39   :  { %383 = vmatpush1.bf16.msra.mxu1 %v1404_v25  ;;  %611 = vperm.xlu0 %1371, %v606_v50  }
  0x3a   :  { %384 = vmatprep.subr.bf16.mxu1 %v1405_v26 }
  0x3b   :  { %1327 = vmatpush3.bf16.msra.mxu0 %v1439_v51  ;;  %v1472_v51 = vld [vmem:[#allocation2 + $0x230] ss:$8 sps:$4 sm:$0xff]  }
  0x3c   :  { %1328 = vmatprep.subr.bf16.mxu0 %v1440_v52  ;;  %v1474_v52 = vld [vmem:[#allocation2 + $0x234] ss:$8 sps:$4 sm:$0xff]  }
  0x3d   :  { %385 = vmatpush1.bf16.msra.mxu1 %v1407_v27 }
  0x3e   :  { %386 = vmatprep.subr.bf16.mxu1 %v1408_v28 }
  0x3f   :  { %1329 = vmatpush3.bf16.msra.mxu0 %v1441_v53  ;;  %v1477_v53 = vld [vmem:[#allocation2 + $0x224] ss:$8 sps:$4 sm:$0xff]  }
  0x40   :  { %1330 = vmatprep.subr.bf16.mxu0 %v1442_v12  ;;  %v1507_v12 = vld [vmem:[#allocation2 + $0x284] ss:$8 sps:$4 sm:$0xff]  }
  0x41   :  { %387 = vmatpush2.bf16.msra.mxu1 %v1410_v29 }
  0x42   :  { %388 = vmatprep.subr.bf16.mxu1 %v1411_v30 }
  0x43   :  { %1331 = vmatpush3.bf16.msra.mxu0 %v1443_v13  ;;  %v1505_v13 = vld [vmem:[#allocation2 + $0x280] ss:$8 sps:$4 sm:$0xff]  }
  0x44   :  { %1332 = vmatprep.subr.bf16.mxu0 %v1444_v14  ;;  %v1510_v14 = vld [vmem:[#allocation2 + $0x274] ss:$8 sps:$4 sm:$0xff]  }
  0x45   :  { %389 = vmatpush2.bf16.msra.mxu1 %v1413_v31 }
  0x46   :  { %390 = vmatprep.subr.bf16.mxu1 %v1414_v32 }
  0x47   :  { %1333 = vmatpush3.bf16.msra.mxu0 %v1445_v15  ;;  %v1508_v15 = vld [vmem:[#allocation2 + $0x270] ss:$8 sps:$4 sm:$0xff]  }
  0x48   :  { %1334 = vmatprep.subr.bf16.mxu0 %v1446_v16 }
  0x49   :  { %391 = vmatpush2.bf16.msra.mxu1 %v1416_v33 }
  0x4a   :  { %392 = vmatprep.subr.bf16.mxu1 %v1417_v34 }
  0x4b   :  { %1335 = vmatpush3.bf16.msra.mxu0 %v1447_v17  ;;  %v451_v17 = vld [vmem:[%s1683_s4 + $0x2] ss:$0 sm:$0xff] }
  0x4c   :  { %707 = vmatprep.subr.bf16.mxu0 %v1450_v18 }
  0x4d   :  { %393 = vmatpush2.bf16.msra.mxu1 %v1419_v35  ;;  %v1448_v35 = vld [vmem:[#allocation2 + $0x1b0] ss:$8 sps:$4 sm:$0xff]  }
  0x4e   :  { %394 = vmatprep.subr.bf16.mxu1 %v1420_v36 }
  0x51   :  { %395 = vmatpush2.bf16.msra.mxu1 %v1422_v37  ;;  %v1453_v37 = vld [vmem:[#allocation2 + $0x1a4] ss:$8 sps:$4 sm:$0xff]  }
  0x52   :  { %396 = vmatprep.subr.bf16.mxu1 %v1423_v38  ;;  %v1451_v38 = vld [vmem:[#allocation2 + $0x1a0] ss:$8 sps:$4 sm:$0xff]  }
  0x55   :  { %397 = vmatpush2.bf16.msra.mxu1 %v1425_v39  ;;  %v1456_v39 = vld [vmem:[#allocation2 + $0x194] ss:$8 sps:$4 sm:$0xff]  }
  0x56   :  { %398 = vmatprep.subr.bf16.mxu1 %v1426_v40  ;;  %v1454_v40 = vld [vmem:[#allocation2 + $0x190] ss:$8 sps:$4 sm:$0xff]  }
  0x59   :  { %399 = vmatpush2.bf16.msra.mxu1 %v1428_v41  ;;  %v1459_v41 = vld [vmem:[#allocation2 + $0x184] ss:$8 sps:$4 sm:$0xff]  }
  0x5a   :  { %400 = vmatprep.subr.bf16.mxu1 %v1429_v42  ;;  %v1457_v42 = vld [vmem:[#allocation2 + $0x180] ss:$8 sps:$4 sm:$0xff]  }
  0x5d   :  { %401 = vmatpush2.bf16.msra.mxu1 %v1431_v43  ;;  %v1462_v43 = vld [vmem:[#allocation2 + $0x174] ss:$8 sps:$4 sm:$0xff]  }
  0x5e   :  { %972 = vmatprep.subr.bf16.mxu1 %v1474_v52 }
  0xee   :  { %v150_v59 = vpop.f32.mrf.mxu0 }
  0xef   :  { %v151_v3 = vadd.f32 %v150_v59, %v65_v61  ;;  %v1483_v59 = vld [vmem:[#allocation2 + $0x204] ss:$8 sps:$4 sm:$0xff]  }
  0xf0   :  { %v152_v62 = vpop.f32.mrf.mxu0 }
  0xf1   :  { %v153_v1 = vadd.f32 %v152_v62, %v69_v60  ;;  %v159_v9 = vmax.f32 %v151_v3, 0.0  ;;  %v1484_v62 = vld [vmem:[#allocation2 + $0x1f0] ss:$8 sps:$4 sm:$0xff]  }
  0xf2   :  { %v154_v63 = vpop.f32.mrf.mxu0  ;;  %v1490_v3 = vld [vmem:[#allocation2 + $0x1d0] ss:$8 sps:$4 sm:$0xff]  }
  0xf3   :  { %v155_v2 = vadd.f32 %v154_v63, %v65_v61  ;;  %v160_v7 = vmax.f32 %v153_v1, 0.0  ;;  %v1486_v61 = vld [vmem:[#allocation2 + $0x1f4] ss:$8 sps:$4 sm:$0xff]   ;;  %v1489_v63 = vld [vmem:[#allocation2 + $0x1e4] ss:$8 sps:$4 sm:$0xff]  }
  0xf4   :  { %v156_v4 = vpop.f32.mrf.mxu0  ;;  %v1487_v1 = vld [vmem:[#allocation2 + $0x1e0] ss:$8 sps:$4 sm:$0xff]  }
  0xf5   :  { %v157_v5 = vadd.f32 %v156_v4, %v69_v60  ;;  %v161_v6 = vmax.f32 %v155_v2, 0.0  ;;  %v1481_v60 = vld [vmem:[#allocation2 + $0x200] ss:$8 sps:$4 sm:$0xff]   ;;  %v1492_v2 = vld [vmem:[#allocation2 + $0x1d4] ss:$8 sps:$4 sm:$0xff]  }
  0xf6   :  { %v1495_v4 = vld [vmem:[#allocation2 + $0x1c4] ss:$8 sps:$4 sm:$0xff]  }
  0xf7   :  { %v162_v8 = vmax.f32 %v157_v5, 0.0  ;;  %v163_v11 = vpack.c.bf16 %v161_v6, %v159_v9  ;;  %v1493_v5 = vld [vmem:[#allocation2 + $0x1c0] ss:$8 sps:$4 sm:$0xff]   ;;  %v1498_v6 = vld [vmem:[#allocation2 + $0x2b4] ss:$8 sps:$4 sm:$0xff]  }
  0xf8   :  { %v1499_v9 = vld [vmem:[#allocation2 + $0x2a0] ss:$8 sps:$4 sm:$0xff]  }
  0xf9   :  { %v164_v10 = vpack.c.bf16 %v162_v8, %v160_v7  ;;  %v1496_v7 = vld [vmem:[#allocation2 + $0x2b0] ss:$8 sps:$4 sm:$0xff]   ;;  %v1501_v8 = vld [vmem:[#allocation2 + $0x2a4] ss:$8 sps:$4 sm:$0xff]  }
  0xfb   :  { %402 = vmatprep.mubr.bf16.mxu1 %v164_v10  ;;  %v1504_v10 = vld [vmem:[#allocation2 + $0x294] ss:$8 sps:$4 sm:$0xff]  }
  0xfc   :  { %403 = vmatmul.mubr.bf16.vlgmr.msra.gmra.mxu1 %v163_v11  ;;  %v1502_v11 = vld [vmem:[#allocation2 + $0x290] ss:$8 sps:$4 sm:$0xff]  }
  0xfd   :  { %973 = vmatpush1.bf16.msra.mxu1 %v1472_v51 }
  0xfe   :  { %974 = vmatprep.subr.bf16.mxu1 %v1477_v53 }
 0x101   :  { %975 = vmatpush1.bf16.msra.mxu1 %v1475_v54 }
 0x102   :  { %976 = vmatprep.subr.bf16.mxu1 %v1480_v55 }
 0x105   :  { %977 = vmatpush1.bf16.msra.mxu1 %v1478_v58 }
 0x106   :  { %978 = vmatprep.subr.bf16.mxu1 %v1483_v59 }
 0x109   :  { %979 = vmatpush1.bf16.msra.mxu1 %v1481_v60 }
 0x10a   :  { %980 = vmatprep.subr.bf16.mxu1 %v1486_v61 }
 0x10d   :  { %981 = vmatpush1.bf16.msra.mxu1 %v1484_v62 }
 0x10e   :  { %982 = vmatprep.subr.bf16.mxu1 %v1489_v63 }
 0x111   :  { %983 = vmatpush1.bf16.msra.mxu1 %v1487_v1 }
 0x112   :  { %984 = vmatprep.subr.bf16.mxu1 %v1492_v2 }
 0x115   :  { %985 = vmatpush1.bf16.msra.mxu1 %v1490_v3  ;;  %v1532_v3 = vld [vmem:[#allocation4 + $0xc8] sm:$0xff]  }
 0x116   :  { %986 = vmatprep.subr.bf16.mxu1 %v1495_v4  ;;  %v1533_v4 = vld [vmem:[#allocation4 + $0x88] sm:$0xff]  }
 0x119   :  { %987 = vmatpush1.bf16.msra.mxu1 %v1493_v5  ;;  %v1534_v5 = vld [vmem:[#allocation4 + $0xc0] sm:$0xff]  }
 0x11a   :  { %988 = vmatprep.subr.bf16.mxu1 %v1498_v6  ;;  %v1535_v6 = vld [vmem:[#allocation4 + $0x80] sm:$0xff]  }
 0x11d   :  { %989 = vmatpush2.bf16.msra.mxu1 %v1496_v7  ;;  %v1271_v7 = vld [vmem:[%s1683_s4 + $0x4] ss:$8 sm:$0x3] }
 0x11e   :  { %990 = vmatprep.subr.bf16.mxu1 %v1501_v8  ;;  %v805_v8 = vrot.slane %v1271_v7, %v1633_v57 }
 0x121   :  { %991 = vmatpush2.bf16.msra.mxu1 %v1499_v9  ;;  %v809_v9 = vrot.slane %v1271_v7, %v1631_v56 }
 0x122   :  { %992 = vmatprep.subr.bf16.mxu1 %v1504_v10 }
 0x125   :  { %993 = vmatpush2.bf16.msra.mxu1 %v1502_v11 }
 0x126   :  { %994 = vmatprep.subr.bf16.mxu1 %v1507_v12 }
 0x129   :  { %995 = vmatpush2.bf16.msra.mxu1 %v1505_v13 }
 0x12a   :  { %996 = vmatprep.subr.bf16.mxu1 %v1510_v14 }
 0x12d   :  { %997 = vmatpush2.bf16.msra.mxu1 %v1508_v15 }
 0x1bc   :  { %v404_v20 = vpop.f32.mrf.mxu1 }
 0x1bd   :  { %v405_v27 = vadd.f32 %v404_v20, %v203_v22 }
 0x1be   :  { %v406_v23 = vpop.f32.mrf.mxu1 }
 0x1bf   :  { %v407_v25 = vadd.f32 %v406_v23, %v207_v21  ;;  %v413_v33 = vmax.f32 %v405_v27, 0.0  ;;  %v1511_v27 = vld [vmem:[#allocation2 + $0x260] ss:$8 sps:$4 sm:$0xff]  }
 0x1c0   :  { %v408_v24 = vpop.f32.mrf.mxu1 }
 0x1c1   :  { %v409_v26 = vadd.f32 %v408_v24, %v203_v22  ;;  %v414_v31 = vmax.f32 %v407_v25, 0.0 }
 0x1c2   :  { %v410_v28 = vpop.f32.mrf.mxu1 }
 0x1c3   :  { %v411_v29 = vadd.f32 %v410_v28, %v207_v21  ;;  %v415_v30 = vmax.f32 %v409_v26, 0.0  ;;  %v1513_v26 = vld [vmem:[#allocation2 + $0x264] ss:$8 sps:$4 sm:$0xff]   ;;  %v1516_v28 = vld [vmem:[#allocation2 + $0x254] ss:$8 sps:$4 sm:$0xff]  }
 0x1c4   :  { %998 = vmatprep.subr.bf16.mxu1 %v1513_v26 }
 0x1c5   :  { %v416_v32 = vmax.f32 %v411_v29, 0.0  ;;  %v417_v36 = vpack.c.bf16 %v415_v30, %v413_v33  ;;  %999 = vmatpush2.bf16.msra.mxu1 %v1511_v27  ;;  %v1514_v29 = vld [vmem:[#allocation2 + $0x250] ss:$8 sps:$4 sm:$0xff]   ;;  %v1519_v30 = vld [vmem:[#allocation2 + $0x244] ss:$8 sps:$4 sm:$0xff]  }
 0x1c6   :  { %1000 = vmatprep.subr.bf16.mxu1 %v1516_v28  ;;  %v1521_v33 = vld [vmem:[#allocation4 + $0xb8] sm:$0xff]  }
 0x1c7   :  { %v418_v34 = vpack.c.bf16 %v416_v32, %v414_v31  ;;  %v1517_v31 = vld [vmem:[#allocation2 + $0x240] ss:$8 sps:$4 sm:$0xff]   ;;  %v1520_v32 = vld [vmem:[#allocation4 + $0xf8] sm:$0xff]  }
 0x1c9   :  { %580 = vmatprep.mubr.bf16.mxu0 %v418_v34  ;;  %1001 = vmatpush2.bf16.msra.mxu1 %v1514_v29  ;;  %v1522_v34 = vld [vmem:[#allocation4 + $0xf0] sm:$0xff]  }
 0x1ca   :  { %581 = vmatmul.mubr.bf16.vlgmr.msra.gmra.mxu0 %v417_v36  ;;  %1002 = vmatprep.subr.bf16.mxu1 %v1519_v30  ;;  %v1524_v36 = vld [vmem:[#allocation4 + $0xe8] sm:$0xff]  }
 0x1cb   :  { %708 = vmatpush1.bf16.msra.mxu0 %v1448_v35  ;;  %739 = vmatprep.mubr.bf16.mxu0 %v1586_v0  ;;  %v1466_v0 = vld [vmem:[#allocation2 + $0x150] ss:$8 sps:$4 sm:$0xff]  }
 0x1cc   :  { %709 = vmatprep.subr.bf16.mxu0 %v1453_v37  ;;  %v1523_v35 = vld [vmem:[#allocation4 + $0xb0] sm:$0xff]   ;;  %v1525_v37 = vld [vmem:[#allocation4 + $0xa8] sm:$0xff]  }
 0x1cd   :  { %1003 = vmatpush2.bf16.msra.mxu1 %v1517_v31 }
 0x1cf   :  { %710 = vmatpush1.bf16.msra.mxu0 %v1451_v38  ;;  %v1526_v38 = vld [vmem:[#allocation4 + $0xe0] sm:$0xff]  }
 0x1d0   :  { %711 = vmatprep.subr.bf16.mxu0 %v1456_v39  ;;  %v1527_v39 = vld [vmem:[#allocation4 + $0xa0] sm:$0xff]  }
 0x1d3   :  { %712 = vmatpush1.bf16.msra.mxu0 %v1454_v40  ;;  %v1528_v40 = vld [vmem:[#allocation4 + $0xd8] sm:$0xff]  }
 0x1d4   :  { %713 = vmatprep.subr.bf16.mxu0 %v1459_v41  ;;  %v1529_v41 = vld [vmem:[#allocation4 + $0x98] sm:$0xff]  }
 0x1d7   :  { %714 = vmatpush1.bf16.msra.mxu0 %v1457_v42  ;;  %v1530_v42 = vld [vmem:[#allocation4 + $0xd0] sm:$0xff]  }
 0x1d8   :  { %715 = vmatprep.subr.bf16.mxu0 %v1462_v43  ;;  %v1531_v43 = vld [vmem:[#allocation4 + $0x90] sm:$0xff]  }
 0x1db   :  { %716 = vmatpush1.bf16.msra.mxu0 %v1460_v44  ;;  %v1253_v44 = vld [vmem:[%s1683_s4 + $0x6] ss:$8 sm:$0x3] }
 0x1dc   :  { %717 = vmatprep.subr.bf16.mxu0 %v1465_v45  ;;  %v618_v45 = vrot.slane %v1253_v44, %v1633_v57 }
 0x1df   :  { %718 = vmatpush1.bf16.msra.mxu0 %v1463_v46  ;;  %v612_v46 = vpop.permute.xlu0 %611 }
 0x1e0   :  { %719 = vmatprep.subr.bf16.mxu0 %v1468_v47  ;;  %v622_v47 = vrot.slane %v1253_v44, %v1631_v56 }
 0x1e3   :  { %720 = vmatpush1.bf16.msra.mxu0 %v1466_v0  ;;  %v1270_v0 = vld [vmem:[%s1683_s4 + $0x3] ss:$8 sm:$0x3] }
 0x1e4   :  { %721 = vmatprep.subr.bf16.mxu0 %v1471_v48  ;;  %v625_v48 = vmul.f32 %v618_v45, %v612_v46  ;;  %v754_v50 = vrot.slane %v1270_v0, %v1633_v57  ;;  %v758_v53 = vrot.slane %v1270_v0, %v1631_v56 }
 0x1e7   :  { %722 = vmatpush1.bf16.msra.mxu0 %v1469_v49  ;;  %v626_v49 = vmul.f32 %v622_v47, %v612_v46 }
 0x1e8   :  { %1342 = vmatprep.subr.bf16.mxu0 %v1520_v32 }
 0x28a   :  { %v1336_v16 = vpop.f32.mrf.mxu0 }
 0x28c   :  { %v1337_v18 = vpop.f32.mrf.mxu0 }
 0x28d   :  { %v1338_v19 = vadd.f32 %v1337_v18, %v1336_v16 }
 0x28e   :  { %v1339_v20 = vpop.f32.mrf.mxu0 }
 0x28f   :  { %v583_v21 = vadd.f32 %v1338_v19, %v451_v17 }
 0x290   :  { %v1340_v22 = vpop.f32.mrf.mxu0 }
 0x291   :  { %v589_v23 = vpack.c.bf16 %v583_v21, %v583_v21  ;;  %1186 = vst [vmem:[%s1684_s5] sm:$0xff] %v583_v21  ;;  %v1341_v24 = vadd.f32 %v1340_v22, %v1339_v20  ;;  %v1049_v21 = vld [vmem:[%s1683_s4 + $0x5] ss:$0 sm:$0xff] }
 0x293   :  { %v586_v25 = vadd.f32 %v1341_v24, %v451_v17  ;;  %740 = vmatmul.mubr.bf16.vlgmr.msra.gmra.mxu0 %v589_v23 }
 0x294   :  { %1343 = vmatpush3.bf16.msra.mxu0 %v1521_v33 }
 0x295   :  { %1188 = vst [vmem:[%s1684_s5 + $0x10] sm:$0xff] %v586_v25  ;;  %1344 = vmatprep.subr.bf16.mxu0 %v1522_v34 }
 0x298   :  { %1345 = vmatpush3.bf16.msra.mxu0 %v1523_v35 }
 0x299   :  { %1346 = vmatprep.subr.bf16.mxu0 %v1524_v36 }
 0x29c   :  { %1347 = vmatpush3.bf16.msra.mxu0 %v1525_v37 }
 0x29d   :  { %1348 = vmatprep.subr.bf16.mxu0 %v1526_v38 }
 0x2a0   :  { %1349 = vmatpush3.bf16.msra.mxu0 %v1527_v39 }
 0x2a1   :  { %1350 = vmatprep.subr.bf16.mxu0 %v1528_v40 }
 0x2a4   :  { %1351 = vmatpush3.bf16.msra.mxu0 %v1529_v41 }
 0x2a5   :  { %1352 = vmatprep.subr.bf16.mxu0 %v1530_v42 }
 0x2a8   :  { %1353 = vmatpush3.bf16.msra.mxu0 %v1531_v43 }
 0x2a9   :  { %1354 = vmatprep.subr.bf16.mxu0 %v1532_v3 }
 0x2ac   :  { %1355 = vmatpush3.bf16.msra.mxu0 %v1533_v4 }
 0x2ad   :  { %1356 = vmatprep.subr.bf16.mxu0 %v1534_v5 }
 0x2b0   :  { %1357 = vmatpush3.bf16.msra.mxu0 %v1535_v6 }
 0x353   :  { %v741_v51 = vpop.f32.mrf.mxu0 }
 0x354   :  { %v742_v52 = vadd.f32 %v741_v51, %v625_v48 }
 0x355   :  { %v743_v54 = vpop.f32.mrf.mxu0 }
 0x356   :  { %v761_v55 = vadd.f32 %v754_v50, %v742_v52  ;;  %v744_v58 = vadd.f32 %v743_v54, %v626_v49 }
 0x357   :  { %v745_v59 = vpop.f32.mrf.mxu0 }
 0x358   :  { %v762_v60 = vadd.f32 %v758_v53, %v744_v58  ;;  %v763_v61 = vmax.f32 %v761_v55, 0.0 }
 0x359   :  { %v746_v62 = vpop.f32.mrf.mxu0 }
 0x35a   :  { %v764_v63 = vmax.f32 %v762_v60, 0.0  ;;  %v765_v2 = vpack.c.bf16 %v763_v61, %v763_v61 }
 0x35c   :  { %v766_v1 = vpack.c.bf16 %v764_v63, %v764_v63 }
 0x35e   :  { %1004 = vmatprep.mubr.bf16.mxu1 %v766_v1 }
 0x35f   :  { %1005 = vmatmul.mubr.bf16.vlgmr.msra.gmra.mxu1 %v765_v2 }
 0x41f   :  { %v1006_v10 = vpop.f32.mrf.mxu1 }
 0x420   :  { %v1007_v11 = vadd.f32 %v1006_v10, %v805_v8 }
 0x421   :  { %v1008_v12 = vpop.f32.mrf.mxu1 }
 0x422   :  { %v1009_v13 = vadd.f32 %v1008_v12, %v809_v9  ;;  %v1013_v14 = vmax.f32 %v1007_v11, 0.0 }
 0x423   :  { %v1010_v15 = vpop.f32.mrf.mxu1 }
 0x424   :  { %v1014_v16 = vmax.f32 %v1009_v13, 0.0  ;;  %v1015_v19 = vpack.c.bf16 %v1013_v14, %v1013_v14 }
 0x425   :  { %v1011_v17 = vpop.f32.mrf.mxu1 }
 0x426   :  { %v1016_v18 = vpack.c.bf16 %v1014_v16, %v1014_v16 }
 0x428   :  { %1178 = vmatprep.mubr.bf16.mxu0 %v1016_v18 }
 0x429   :  { %1179 = vmatmul.mubr.bf16.vlgmr.msra.gmra.mxu0 %v1015_v19 }
 0x4e9   :  { %v1358_v20 = vpop.f32.mrf.mxu0 }
 0x4eb   :  { %v1359_v57 = vpop.f32.mrf.mxu0 }
 0x4ec   :  { %v1360_v22 = vadd.f32 %v1359_v57, %v1358_v20 }
 0x4ed   :  { %v1361_v56 = vpop.f32.mrf.mxu0 }
 0x4ee   :  { %v1181_v23 = vadd.f32 %v1360_v22, %v1049_v21 }
 0x4ef   :  { %v1362_v24 = vpop.f32.mrf.mxu0 }
 0x4f0   :  { %1187 = vst [vmem:[%s1684_s5 + $0x8] sm:$0xff] %v1181_v23 }
 0x4f1   :  { %1193 = vsyncpa [#allocation3], 1 }
 0x4f2   :  { %1194 = vsyncpa [#allocation5], 1 }

</bundles_post_ra>
